<compile_context>
chip_gen: v7x
topology: tpu7x:2x2x1
jax: 0.10.0
libtpu: 0.0.40
codegen_flags: <defaults>
</compile_context>

<pallas_src>
import math

import jax
import jax.numpy as jnp
from jax.experimental import pallas as pl
from jax.experimental.pallas import tpu as pltpu


def _round_up(x, m):
    return ((x + m - 1) // m) * m


def _pad2(w, rows, cols):
    return jnp.pad(w, ((0, rows - w.shape[0]), (0, cols - w.shape[1])))


def _make_nonlocal_kernel(n_valid, c_pad, tq):
    def kernel(x_ref, wphi_ref, wtg_ref, out_ref, phi_s):
        q = pl.program_id(1)
        n_pad = phi_s.shape[0]

        # Once per batch element: phi projection (1/sqrt(C) pre-folded into the
        # weight) into resident bf16 scratch, and residual init of the output
        # block, which doubles as the f32 accumulator across q tiles.
        @pl.when(q == 0)
        def _():
            xb16 = x_ref[...].astype(jnp.bfloat16)                        # (N_pad, C_pad)
            phi_s[...] = jnp.dot(
                xb16, wphi_ref[...],
                preferred_element_type=jnp.float32).astype(jnp.bfloat16)
            out_ref[...] = x_ref[...]

        # Per-tile theta | (g @ gamma*W_mask) projection of this tile's rows.
        qo = pl.multiple_of(q * tq, tq)
        x_t = x_ref[pl.ds(qo, tq), :].astype(jnp.bfloat16)                # (TQ, C_pad)
        tg = jnp.dot(x_t, wtg_ref[...],
                     preferred_element_type=jnp.float32)                  # (TQ, 2*C_pad)
        theta_t = tg[:, :c_pad].astype(jnp.bfloat16)                      # (TQ, C_pad)
        g_t = tg[:, c_pad:]                                               # (TQ, C_pad) f32

        # sim[p, qq] = sum_c phi[p, c] * theta[q_tile + qq, c]
        sim = jax.lax.dot_general(
            phi_s[...], theta_t, (((1,), (1,)), ((), ())),
            preferred_element_type=jnp.float32)                           # (N_pad, TQ)

        # Softmax over p (axis 0), exact per column block.  Padded p rows have
        # phi == 0 exactly, so each adds exp(-m) to the denominator; correct
        # the (1, TQ) column sums instead of masking the full (N_pad, TQ) block.
        m = jnp.max(sim, axis=0, keepdims=True)                           # (1, TQ), >= 0
        e = jnp.exp(sim - m)                                              # (N_pad, TQ)
        colsum = jnp.sum(e, axis=0, keepdims=True)
        if n_valid < n_pad:
            colsum = colsum - jnp.float32(n_pad - n_valid) * jnp.exp(-m)
        inv = pl.reciprocal(colsum, approx=True)                          # (1, TQ)

        # Normalise the small (TQ, C_pad) g tile instead of the (N_pad, TQ)
        # probabilities; padded output rows pick up garbage but are stripped
        # in the wrapper (padded buffer is never consumed directly).
        g_scaled = (g_t * inv.T).astype(jnp.bfloat16)                     # (TQ, C_pad)
        contrib = jnp.dot(e.astype(jnp.bfloat16), g_scaled,
                          preferred_element_type=jnp.float32)             # (N_pad, C_pad)
        out_ref[...] = (out_ref[...] + contrib).astype(out_ref.dtype)

    return kernel


def _pick_tq(n, c_pad, vmem_limit):
    """TQ from {128, 256, 512}: minimise padded columns under a VMEM budget."""
    best = None
    for t in (128, 256, 512):
        n_pad = _round_up(n, t)
        # Rough resident bytes: double-buffered x/out blocks (2*4 B each) plus
        # bf16 phi scratch over (n_pad, c_pad), plus ~12 B of sim/e temporaries
        # over (n_pad, t).
        est = n_pad * c_pad * 18 + n_pad * t * 12
        if t != 128 and est > 0.7 * vmem_limit:
            continue
        key = (n_pad - n, -t)          # least padding, then prefer larger tile
        if best is None or key < best[0]:
            best = (key, t)
    return best[1]


def nonlocal_block(x, w_phi, w_theta, w_g, w_mask, gamma, *, tq=None):
    """x: (B, C, D, H, W) float32 (NCDHW, like PyTorch Conv3d). Weights: (C_out, C_in)."""
    B, C, D, H, W = x.shape
    N = D * H * W
    C_pad = _round_up(C, 128)

    # Generation-aware VMEM budget: ~48 MiB on v7x (64 MiB parts), ~100 MiB on
    # v5e/v6e (128 MiB parts).
    try:
        vmem_cap = int(pltpu.get_tpu_info().vmem_capacity_bytes)
    except Exception:
        vmem_cap = 64 * 1024 * 1024
    vmem_limit = max(32 * 1024 * 1024,
                     min(100 * 1024 * 1024, vmem_cap - 16 * 1024 * 1024))

    if tq is None:
        tq = _pick_tq(N, C_pad, vmem_limit)
    N_pad = _round_up(N, tq)
    n_q = N_pad // tq

    # NCDHW -> (B, N, C) (row-major spatial flatten, matching torch .view(B, C, -1)),
    # zero-padded to lane/sublane friendly sizes.
    x_nc = jnp.transpose(x, (0, 2, 3, 4, 1)).reshape(B, N, C)
    x_nc = jnp.pad(x_nc, ((0, 0), (0, N_pad - N), (0, C_pad - C)))

    scale = math.sqrt(C)  # inter_channel == channels
    # phi weight with 1/sqrt(C) folded in.
    w_phi_t = _pad2((w_phi / scale).T, C_pad, C_pad).astype(jnp.bfloat16)
    # conv_mask and gamma folded into the g projection (composed in f32).
    w_g_mask = w_g.T @ (gamma[0] * w_mask).T                               # (C, C)
    w_tg = jnp.concatenate(
        [_pad2(w_theta.T, C_pad, C_pad), _pad2(w_g_mask, C_pad, C_pad)],
        axis=1).astype(jnp.bfloat16)                                       # (C_pad, 2*C_pad)

    kernel = _make_nonlocal_kernel(N, C_pad, tq)

    cost = pl.CostEstimate(
        flops=int(B * (4 * N_pad * N_pad * C_pad + 6 * N_pad * C_pad * C_pad)),
        transcendentals=int(B * N_pad * N_pad),
        bytes_accessed=int(B * N_pad * C_pad * 8 + 3 * C_pad * C_pad * 2),
    )

    out_nc = pl.pallas_call(
        kernel,
        out_shape=jax.ShapeDtypeStruct((B, N_pad, C_pad), x.dtype),
        grid_spec=pltpu.PrefetchScalarGridSpec(
            num_scalar_prefetch=0,
            grid=(B, n_q),
            in_specs=[
                pl.BlockSpec((None, N_pad, C_pad), lambda b, q: (b, 0, 0)),  # x (resident over q)
                pl.BlockSpec((C_pad, C_pad), lambda b, q: (0, 0)),           # w_phi / sqrt(C)
                pl.BlockSpec((C_pad, 2 * C_pad), lambda b, q: (0, 0)),       # [w_theta | w_g @ (gamma*w_mask)]
            ],
            out_specs=pl.BlockSpec((None, N_pad, C_pad), lambda b, q: (b, 0, 0)),
            scratch_shapes=[pltpu.VMEM((N_pad, C_pad), jnp.bfloat16)],       # phi (resident)
        ),
        compiler_params=pltpu.CompilerParams(
            dimension_semantics=("parallel", "arbitrary"),
            vmem_limit_bytes=vmem_limit,
        ),
        cost_estimate=cost,
    )(x_nc, w_phi_t, w_tg)

    # Strip padding, (B, N, C) -> NCDHW.
    out_nc = out_nc[:, :N, :C]
    return jnp.transpose(out_nc.reshape(B, D, H, W, C), (0, 4, 1, 2, 3))


def reference(x, w_phi, w_theta, w_g, w_mask, gamma):
    """Pure-JAX f32 replica of the PyTorch forward, for verification."""
    B, C, D, H, W = x.shape
    N = D * H * W
    xf = x.reshape(B, C, N)
    phi = jnp.einsum('oc,bcn->bon', w_phi, xf)
    theta = jnp.einsum('oc,bcn->bon', w_theta, xf)
    g = jnp.einsum('oc,bcn->bon', w_g, xf)
    sim = jnp.einsum('bcp,bcq->bpq', phi, theta) / math.sqrt(C)
    sim = jax.nn.softmax(sim, axis=1)          # torch Softmax(dim=1)
    out = jnp.einsum('bpq,bcq->bpc', sim, g)   # (B, N, C)
    out = jnp.transpose(out, (0, 2, 1)).reshape(B, C, D, H, W)
    out = jnp.einsum('oc,bcdhw->bodhw', w_mask, out)
    return gamma[0] * out + x


if __name__ == "__main__":
    key = jax.random.PRNGKey(0)
    B, C, D, H, W = 2, 8, 2, 4, 4   # small 3-D input: (batch, channels, depth, height, width)
    k1, k2, k3, k4, k5 = jax.random.split(key, 5)

    x = jax.random.normal(k1, (B, C, D, H, W), jnp.float32)
    # Conv3d 1x1x1 weights are (C_out, C_in, 1, 1, 1); we keep the squeezed (C_out, C_in).
    w_phi = jax.random.normal(k2, (C, C), jnp.float32) * 0.1
    w_theta = jax.random.normal(k3, (C, C), jnp.float32) * 0.1
    w_g = jax.random.normal(k4, (C, C), jnp.float32) * 0.1
    w_mask = jax.random.normal(k5, (C, C), jnp.float32) * 0.1
    # PyTorch inits gamma = zeros(1) (which would make out == residual); use a
    # deterministic nonzero value so the non-local path is actually exercised.
    gamma = jnp.array([0.5], jnp.float32)

    out = nonlocal_block(x, w_phi, w_theta, w_g, w_mask, gamma)
    out = jax.block_until_ready(out)

    ref = reference(x, w_phi, w_theta, w_g, w_mask, gamma)
    err = float(jnp.max(jnp.abs(out - ref)))
    assert out.shape == x.shape and out.dtype == x.dtype
    # bf16 MXU operands + approx reciprocal => looser tolerance than pure f32.
    assert err < 2e-2, f"max abs err {err}"
    print("KERNEL_OK")
</pallas_src>

<mosaic_0001>
module attributes {stable_mosaic.version = 11 : i64} {
  func.func @kernel(%arg0: i32, %arg1: i32, %arg2: memref<1x128x128xf32, #tpu.memory_space<vmem>>, %arg3: memref<128x128xbf16, #tpu.memory_space<vmem>>, %arg4: memref<128x256xbf16, #tpu.memory_space<vmem>>, %arg5: memref<1x128x128xf32, #tpu.memory_space<vmem>>, %arg6: memref<128x128xbf16, #tpu.memory_space<vmem>>) attributes {dimension_semantics = [#tpu.dimension_semantics<parallel>, #tpu.dimension_semantics<arbitrary>], iteration_bounds = array<i64: 2, 1>, scalar_prefetch = 0 : i64, scratch_operands = 1 : i64, tpu.core_type = #tpu.core_type<tc>, window_params = [{transform_indices = @transform_0, window_bounds = array<i64: 1, 128, 128>}, {pipeline_mode = #tpu.pipeline_mode<synchronous>, transform_indices = @transform_1, window_bounds = array<i64: 128, 128>}, {pipeline_mode = #tpu.pipeline_mode<synchronous>, transform_indices = @transform_2, window_bounds = array<i64: 128, 256>}, {transform_indices = @transform_3, window_bounds = array<i64: 1, 128, 128>}]} {
    %c0_i32 = arith.constant 0 : i32
    %0 = arith.cmpi eq, %arg1, %c0_i32 : i32
    %1 = arith.extui %0 : i1 to i32
    %c0_i32_0 = arith.constant 0 : i32
    %2 = arith.cmpi ne, %1, %c0_i32_0 : i32
    scf.if %2 {
      %c0_18 = arith.constant 0 : index
      %c0_19 = arith.constant 0 : index
      %c0_20 = arith.constant 0 : index
      %42 = vector.load %arg2[%c0_18, %c0_19, %c0_20] : memref<1x128x128xf32, #tpu.memory_space<vmem>>, vector<1x128x128xf32>
      %43 = vector.shape_cast %42 : vector<1x128x128xf32> to vector<128x128xf32>
      %44 = arith.truncf %43 : vector<128x128xf32> to vector<128x128xbf16>
      %c0_21 = arith.constant 0 : index
      %c0_22 = arith.constant 0 : index
      %45 = vector.load %arg3[%c0_21, %c0_22] : memref<128x128xbf16, #tpu.memory_space<vmem>>, vector<128x128xbf16>
      %cst_23 = arith.constant dense<0.000000e+00> : vector<128x128xf32>
      %46 = tpu.matmul %44, %45, %cst_23 {dimension_numbers = #tpu.dot_dimension_numbers<[1], [0], [0], [1], [0, 0, 1, 1], [], []>} : vector<128x128xbf16>, vector<128x128xbf16>, vector<128x128xf32> -> vector<128x128xf32>
      %47 = arith.truncf %46 : vector<128x128xf32> to vector<128x128xbf16>
      %c0_24 = arith.constant 0 : index
      %c0_25 = arith.constant 0 : index
      %48 = vector.load %arg6[%c0_24, %c0_25] : memref<128x128xbf16, #tpu.memory_space<vmem>>, vector<128x128xbf16>
      tpu.vector_store %arg6[%c0_24, %c0_25], %47 {strides = array<i32>} : memref<128x128xbf16, #tpu.memory_space<vmem>>, vector<128x128xbf16>,
      %c0_26 = arith.constant 0 : index
      %c0_27 = arith.constant 0 : index
      %c0_28 = arith.constant 0 : index
      %49 = vector.load %arg2[%c0_26, %c0_27, %c0_28] : memref<1x128x128xf32, #tpu.memory_space<vmem>>, vector<1x128x128xf32>
      %50 = vector.shape_cast %49 : vector<1x128x128xf32> to vector<128x128xf32>
      %c0_29 = arith.constant 0 : index
      %c0_30 = arith.constant 0 : index
      %c0_31 = arith.constant 0 : index
      %51 = vector.load %arg5[%c0_29, %c0_30, %c0_31] : memref<1x128x128xf32, #tpu.memory_space<vmem>>, vector<1x128x128xf32>
      %52 = vector.shape_cast %51 : vector<1x128x128xf32> to vector<128x128xf32>
      %53 = vector.shape_cast %50 : vector<128x128xf32> to vector<1x128x128xf32>
      tpu.vector_store %arg5[%c0_29, %c0_30, %c0_31], %53 {strides = array<i32>} : memref<1x128x128xf32, #tpu.memory_space<vmem>>, vector<1x128x128xf32>,
    } else {
    }
    %c128_i32 = arith.constant 128 : i32
    %3 = arith.muli %arg1, %c128_i32 : i32
    %4 = tpu.assume_multiple %3, 128 : i32
    %c0 = arith.constant 0 : index
    %5 = arith.index_cast %4 : i32 to index
    %c0_1 = arith.constant 0 : index
    %6 = vector.load %arg2[%c0, %5, %c0_1] : memref<1x128x128xf32, #tpu.memory_space<vmem>>, vector<1x128x128xf32>
    %7 = vector.shape_cast %6 : vector<1x128x128xf32> to vector<128x128xf32>
    %8 = arith.truncf %7 : vector<128x128xf32> to vector<128x128xbf16>
    %c0_2 = arith.constant 0 : index
    %c0_3 = arith.constant 0 : index
    %9 = vector.load %arg4[%c0_2, %c0_3] : memref<128x256xbf16, #tpu.memory_space<vmem>>, vector<128x256xbf16>
    %cst = arith.constant dense<0.000000e+00> : vector<128x256xf32>
    %10 = tpu.matmul %8, %9, %cst {dimension_numbers = #tpu.dot_dimension_numbers<[1], [0], [0], [1], [0, 0, 1, 1], [], []>} : vector<128x128xbf16>, vector<128x256xbf16>, vector<128x256xf32> -> vector<128x256xf32>
    %11 = vector.extract_strided_slice %10 {offsets = [0, 0], sizes = [128, 128], strides = [1, 1]} : vector<128x256xf32> to vector<128x128xf32>
    %12 = arith.truncf %11 : vector<128x128xf32> to vector<128x128xbf16>
    %13 = vector.extract_strided_slice %10 {offsets = [0, 128], sizes = [128, 128], strides = [1, 1]} : vector<128x256xf32> to vector<128x128xf32>
    %c0_4 = arith.constant 0 : index
    %c0_5 = arith.constant 0 : index
    %14 = vector.load %arg6[%c0_4, %c0_5] : memref<128x128xbf16, #tpu.memory_space<vmem>>, vector<128x128xbf16>
    %cst_6 = arith.constant dense<0.000000e+00> : vector<128x128xf32>
    %15 = tpu.matmul %14, %12, %cst_6 {dimension_numbers = #tpu.dot_dimension_numbers<[1], [1], [0], [0], [0, 0, 1, 0], [], []>} : vector<128x128xbf16>, vector<128x128xbf16>, vector<128x128xf32> -> vector<128x128xf32>
    %cst_7 = arith.constant dense<0xFF800000> : vector<128xf32>
    %16 = vector.multi_reduction <maximumf>, %15, %cst_7 [0] : vector<128x128xf32> to vector<128xf32>
    %17 = vector.shape_cast %16 : vector<128xf32> to vector<1x128xf32>
    %18 = vector.broadcast %17 : vector<1x128xf32> to vector<128x128xf32>
    %19 = arith.subf %15, %18 : vector<128x128xf32>
    %20 = math.exp %19 : vector<128x128xf32>
    %cst_8 = arith.constant dense<0.000000e+00> : vector<128xf32>
    %21 = vector.multi_reduction <add>, %20, %cst_8 [0] : vector<128x128xf32> to vector<128xf32>
    %22 = vector.shape_cast %21 : vector<128xf32> to vector<1x128xf32>
    %cst_9 = arith.constant 0.000000e+00 : f32
    %23 = vector.broadcast %cst_9 : f32 to vector<1x128xf32>
    %24 = arith.subf %23, %17 : vector<1x128xf32>
    %25 = math.exp %24 : vector<1x128xf32>
    %cst_10 = arith.constant 9.600000e+01 : f32
    %26 = vector.broadcast %cst_10 : f32 to vector<1x128xf32>
    %27 = arith.mulf %26, %25 : vector<1x128xf32>
    %28 = arith.subf %22, %27 : vector<1x128xf32>
    %29 = tpu.reciprocal %28 {approx = true} : vector<1x128xf32> -> vector<1x128xf32>
    %30 = tpu.transpose %29, [1, 0] : vector<1x128xf32> -> vector<128x1xf32>
    %31 = vector.broadcast %30 : vector<128x1xf32> to vector<128x128xf32>
    %32 = arith.mulf %13, %31 : vector<128x128xf32>
    %33 = arith.truncf %32 : vector<128x128xf32> to vector<128x128xbf16>
    %34 = arith.truncf %20 : vector<128x128xf32> to vector<128x128xbf16>
    %cst_11 = arith.constant dense<0.000000e+00> : vector<128x128xf32>
    %35 = tpu.matmul %34, %33, %cst_11 {dimension_numbers = #tpu.dot_dimension_numbers<[1], [0], [0], [1], [0, 0, 1, 1], [], []>} : vector<128x128xbf16>, vector<128x128xbf16>, vector<128x128xf32> -> vector<128x128xf32>
    %c0_12 = arith.constant 0 : index
    %c0_13 = arith.constant 0 : index
    %c0_14 = arith.constant 0 : index
    %36 = vector.load %arg5[%c0_12, %c0_13, %c0_14] : memref<1x128x128xf32, #tpu.memory_space<vmem>>, vector<1x128x128xf32>
    %37 = vector.shape_cast %36 : vector<1x128x128xf32> to vector<128x128xf32>
    %38 = arith.addf %37, %35 : vector<128x128xf32>
    %c0_15 = arith.constant 0 : index
    %c0_16 = arith.constant 0 : index
    %c0_17 = arith.constant 0 : index
    %39 = vector.load %arg5[%c0_15, %c0_16, %c0_17] : memref<1x128x128xf32, #tpu.memory_space<vmem>>, vector<1x128x128xf32>
    %40 = vector.shape_cast %39 : vector<1x128x128xf32> to vector<128x128xf32>
    %41 = vector.shape_cast %38 : vector<128x128xf32> to vector<1x128x128xf32>
    tpu.vector_store %arg5[%c0_15, %c0_16, %c0_17], %41 {strides = array<i32>} : memref<1x128x128xf32, #tpu.memory_space<vmem>>, vector<1x128x128xf32>,
    return
  }
  func.func @transform_0(%arg0: i32, %arg1: i32) -> (i32, i32, i32) {
    %c0_i32 = arith.constant 0 : i32
    %c0_i32_0 = arith.constant 0 : i32
    %c0_i32_1 = arith.constant 0 : i32
    return %arg0, %c0_i32, %c0_i32_0 : i32, i32, i32
  }
  func.func @transform_1(%arg0: i32, %arg1: i32) -> (i32, i32) {
    %c0_i32 = arith.constant 0 : i32
    %c0_i32_0 = arith.constant 0 : i32
    %c0_i32_1 = arith.constant 0 : i32
    return %c0_i32, %c0_i32_0 : i32, i32
  }
  func.func @transform_2(%arg0: i32, %arg1: i32) -> (i32, i32) {
    %c0_i32 = arith.constant 0 : i32
    %c0_i32_0 = arith.constant 0 : i32
    %c0_i32_1 = arith.constant 0 : i32
    return %c0_i32, %c0_i32_0 : i32, i32
  }
  func.func @transform_3(%arg0: i32, %arg1: i32) -> (i32, i32, i32) {
    %c0_i32 = arith.constant 0 : i32
    %c0_i32_0 = arith.constant 0 : i32
    %c0_i32_1 = arith.constant 0 : i32
    return %arg0, %c0_i32, %c0_i32_0 : i32, i32, i32
  }
}

</mosaic_0001>

<bundles_post_ra>
// kernel: tpu_custom_call.1
= control target key start
LH: loop header
LB: loop body
LE: loop exit
PB: predicated region body
PF: predicated region fallthrough
CT: control target
= control target key end

     0   :  { %8 = vsyncpa [#allocation4], 0  ;;  %s2398_s0 = inlined_call_operand.hbm [shape: f32[2,128,128], index: 0, kind: input, shape index: {}]   ;;  %s2399_s1 = inlined_call_operand.hbm [shape: bf16[128,128], index: 1, kind: input, shape index: {}]   ;;  %s2400_s2 = inlined_call_operand.hbm [shape: bf16[128,256], index: 2, kind: input, shape index: {}]   ;;  %s2401_s3 = inlined_call_operand.hbm [shape: f32[2,128,128], index: 3, kind: output, shape index: {}]  }
   0x1   :  { %10 = vsyncpa [#allocation4 + $0x1], 0 }
   0x2   :  { %11 = vsyncpa [#allocation7], 0 }
   0x3   :  { %12 = vsyncpa [#allocation5], 0 }
   0x4   :  { %14 = vsyncpa [#allocation5 + $0x1], 0  ;;  %s1872_s12 = smov 0   ;;  %s1874_s13 = smov 0  }
   0x5   :  { %s1876_s14 = smov 0   ;;  %s1878_s15 = smov 0  }
   0x6   :  { %s1880_s16 = smov 0   ;;  %s1882_s17 = smov 0  }
   0x7 LB: > { %s1317_s18 = sadd.s32 4294967295, %s1839_s17   ;;  %s1318_s19 = sadd.s32 4294967294, %s1839_s17   ;;  %s1839_s17 = sphi %s1882_s17, %s20_s17   ;;  %s1835_s16 = sphi %s1880_s16, %s2437_s16   ;;  %s1831_s15 = sphi %s1878_s15, %s2436_s15   ;;  %s1827_s14 = sphi %s1876_s14, %s2435_s14   ;;  %s1823_s13 = sphi %s1874_s13, %s2434_s13   ;;  %s1819_s12 = sphi %s1872_s12, %s2433_s12  }
   0x8   : > { %p52_p0 = scmp.ne.s32.totalorder %s1823_s13, %s1819_s12  ;;  %p1906_p1 = scmp.eq.s32.totalorder %s1317_s18, 0 }
   0x9   : > { %p1910_p2 = scmp.eq.s32.totalorder %s1317_s18, 1  ;;  %p124_p3 = scmp.eq.s32.totalorder %s1318_s19, 1 }
   0xa   : > { %s2410_s20 = scalar_select %p1906_p1, 1, 0 }
   0xb   : > { %p1916_p4 = por %p1906_p1, %p52_p0  ;;  %p1319_p5 = scmp.ge.s32.totalorder %s1839_s17, 1 }
   0xc   : > { %p1921_p6 = por %p124_p3, %p52_p0  ;;  %p131_p7 = scmp.lt.s32.totalorder %s1839_s17, 3 }
   0xd   : > { %s2412_s22 = scalar_select %p1916_p4, 1, 0 }
   0xe   : > { %s2413_s23 = scalar_select %p1921_p6, 1, 0 }
   0xf   : > { %p1926_p8 = pnand %p1319_p5, %p131_p7  ;;  %s1841_s25 = smov [#allocation6]  }
  0x10   : > { %s143_s26 = sshll.u32 %s1841_s25, 4  ;;  %s1842_s28 = smov [#allocation8]   ;;  %s1930_s26 = int_to_ptr.vmem [resolvable:$true] %s143_s26 }
  0x11   : > { %p1518_p9 = pneg %p1926_p8  ;;  %s156_s29 = sshll.u32 %s1842_s28, 4  ;;  %s1941_s29 = int_to_ptr.vmem [resolvable:$true] %s156_s29 }
  0x12   : > { %s1667_s5 = scalar_lea.hbm %s2399_s1, 1024 }
  0x13   : > { %p1937_p11 = pnand %p1518_p9, %p1906_p1  ;;  %p1668_p12 = scmp.ne.s32.totalorder %s2399_s1, %s1667_s5 }
  0x14   : > { %p1674_p5 = scmp.lt.u32.totalorder %s1667_s5, %s2399_s1 }
  0x15   : > { %p1669_p13 = pneg %p1937_p11 }
  0x17   : > { %p1670_p0 = pnand %p1669_p13, %p1668_p12 }
  0x19   : > { %p1671_p3 = pneg %p1670_p0 }
  0x1b   : > { %p1676_p7 = pnand %p1674_p5, %p1671_p3 }
  0x1d   : > { %1679 = shalt.err (!%p1676_p7)
}
  0x1e   : > { %s1680_s10 = scalar_lea.vmem %s1930_s26, 1024  ;;  %p1688_p1 = scmp.lt.s32.totalorder %s1930_s26, %s1930_s26 }
  0x1f   : > { %p1681_p9 = scmp.ne.s32.totalorder %s1930_s26, %s1680_s10  ;;  %p1689_p12 = scmp.lt.s32.totalorder %s1680_s10, %s1680_s10 }
  0x21   : > { %p1683_p10 = pnand %p1681_p9, %p1669_p13  ;;  %p1690_p0 = por %p1689_p12, %p1688_p1 }
  0x23   : > { %p1684_p6 = pneg %p1683_p10 }
  0x25   : > { %p1691_p4 = pnand %p1690_p0, %p1684_p6 }
  0x27   : > { %1694 = shalt.err (!%p1691_p4)
}
  0x28   : > { %s1843_s11 = smov 64   ;;  %s1844_s18 = smov 4  }
  0x29   : > { %1521 = dma.hbm_to_vmem [thread:$0]  (!%p1937_p11), %s2399_s1, 1024, %s1930_s26, [#allocation7], %s1843_s11, %s1843_s11, %s1844_s18  }
  0x2a   : > { %s1695_s4 = scalar_lea.hbm %s2400_s2, 2048 }
  0x2b   : > { %p1696_p1 = scmp.ne.s32.totalorder %s2400_s2, %s1695_s4  ;;  %p1702_p10 = scmp.lt.u32.totalorder %s1695_s4, %s2400_s2 }
  0x2d   : > { %p1698_p4 = pnand %p1696_p1, %p1669_p13 }
  0x2f   : > { %p1699_p6 = pneg %p1698_p4 }
  0x31   : > { %p1704_p3 = pnand %p1702_p10, %p1699_p6 }
  0x33   : > { %1707 = shalt.err (!%p1704_p3)
}
  0x34   : > { %s1708_s26 = scalar_lea.vmem %s1941_s29, 2048  ;;  %p1716_p12 = scmp.lt.s32.totalorder %s1941_s29, %s1941_s29 }
  0x35   : > { %p1709_p5 = scmp.ne.s32.totalorder %s1941_s29, %s1708_s26  ;;  %p1717_p0 = scmp.lt.s32.totalorder %s1708_s26, %s1708_s26 }
  0x37   : > { %p1711_p7 = pnand %p1709_p5, %p1669_p13  ;;  %p1718_p1 = por %p1717_p0, %p1716_p12 }
  0x39   : > { %p1712_p9 = pneg %p1711_p7 }
  0x3b   : > { %p1719_p4 = pnand %p1718_p1, %p1712_p9 }
  0x3d   : > { %1722 = shalt.err (!%p1719_p4)
}
  0x3e   : > { %s1845_s9 = smov 128   ;;  %s1846_s10 = smov 8  }
  0x3f   : > { %1524 = dma.hbm_to_vmem [thread:$0]  (!%p1937_p11), %s2400_s2, 2048, %s1941_s29, [#allocation7], %s1845_s9, %s1845_s9, %s1846_s10  }
  0x40   : > { %s32_s19 = sadd.s32 1, %s1835_s16  ;;  %s39_s25 = sadd.s32 1, %s1827_s14 }
  0x41   : > { %p34_p13 = scmp.ge.s32.totalorder %s32_s19, 2  ;;  %p46_p6 = scmp.ne.s32.totalorder %s1827_s14, %s1823_s13 }
  0x42   : > { %p47_p10 = scmp.eq.s32.totalorder %s1839_s17, 0  ;;  %p1535_p3 = scmp.lt.s32.totalorder %s1839_s17, 2 }
  0x43   : > { %s2439_s19 = smov (%p34_p13, %s32_s19), 0  ;;  %p2008_p7 = por %p1910_p2, %p46_p6 }
  0x44   : > { %p48_p5 = por %p47_p10, %p46_p6  ;;  %s36_s28 = ssub.s32 %s1835_s16, %s2439_s19 }
  0x45   : > { %s2416_s27 = scalar_select %p2008_p7, 1, 0 }
  0x46   : > { %s170_s30 = sand.u32 1, %s1827_s14   ;;  %p37_p9 = scmp.eq.s32.totalorder %s36_s28, 0 }
  0x47   : > { %s1323_s29 = sshll.u32 %s170_s30, 7  ;;  %s1360_s4 = sshll.u32 %s1835_s16, 11 }
  0x48   : > { %s2017_s5 = scalar_select %p37_p9, %s1827_s14, %s39_s25  }
  0x49   : > { %s2022_s8 = scalar_lea.hbm %s2398_s0, %s1360_s4  ;;  %s174_s21 = scalar_lea.vmem [#allocation3], %s1323_s29 }
  0x4a   : > { %s181_s26 = sshll.u32 %s174_s21, 4  ;;  %p2026_p2 = pnand %p1535_p3, %p48_p5  ;;  %s2030_s26 = int_to_ptr.vmem [resolvable:$true] %s181_s26 }
  0x4b   : > { %s2032_s18 = scalar_lea.sflag [#allocation4], %s170_s30  ;;  %s1723_s25 = scalar_lea.hbm %s2022_s8, 2048 }
  0x4c   : > { %p1724_p11 = scmp.ne.s32.totalorder %s2022_s8, %s1723_s25  ;;  %p1725_p12 = pneg %p2026_p2 }
  0x4d   : > { %s1728_s4 = scalar_lea.hbm %s2398_s0, 4096  ;;  %p1729_p4 = scmp.lt.u32.totalorder %s2022_s8, %s2398_s0 }
  0x4e   : > { %p1726_p0 = pnand %p1725_p12, %p1724_p11  ;;  %p1730_p13 = scmp.lt.u32.totalorder %s1728_s4, %s1723_s25 }
  0x4f   : > { %p1732_p10 = scmp.lt.u32.totalorder %s1723_s25, %s2022_s8 }
  0x50   : > { %p1727_p1 = pneg %p1726_p0  ;;  %p1731_p6 = por %p1730_p13, %p1729_p4 }
  0x52   : > { %p1733_p3 = por %p1732_p10, %p1731_p6 }
  0x54   : > { %p1734_p5 = pnand %p1733_p3, %p1727_p1 }
  0x56   : > { %1737 = shalt.err (!%p1734_p5)
}
  0x57   : > { %s1738_s30 = scalar_lea.vmem %s2030_s26, 2048  ;;  %s1847_s21 = smov [#allocation3]  }
  0x58   : > { %p1739_p9 = scmp.ne.s32.totalorder %s2030_s26, %s1738_s30  ;;  %s1743_s28 = sshll.u32 %s1847_s21, 4  ;;  %s1744_s28 = int_to_ptr.vmem [resolvable:$false] %s1743_s28 }
  0x59   : > { %s1745_s29 = scalar_lea.vmem %s1744_s28, 4096  ;;  %p1746_p7 = scmp.lt.s32.totalorder %s2030_s26, %s1744_s28 }
  0x5a   : > { %p1741_p11 = pnand %p1739_p9, %p1725_p12  ;;  %p1747_p4 = scmp.lt.s32.totalorder %s1745_s29, %s1738_s30 }
  0x5c   : > { %p1742_p0 = pneg %p1741_p11  ;;  %p1748_p13 = por %p1747_p4, %p1746_p7 }
  0x5e   : > { %p1749_p6 = pnand %p1748_p13, %p1742_p0 }
  0x60   : > { %1752 = shalt.err (!%p1749_p6)
}
  0x61   : > { %1528 = dma.hbm_to_vmem [thread:$0]  (!%p2026_p2), %s2022_s8, 2048, %s2030_s26, %s2032_s18, %s1845_s9, %s1845_s9, %s1846_s10  }
  0x62   : > { %193 = sbr.rel (%p1926_p8) target bundleno = 1336 (0x538), region = 32 }
  0x69   : > { %s2066_s25 = sand.u32 1, %s1823_s13   ;;  %p2418_p7 = scmp.ne.s32.totalorder %s2412_s22, 0 }
  0x6a   : > { %s1327_s4 = sshll.u32 %s2066_s25, 7  ;;  %s196_s6 = scalar_lea.sflag [#allocation4], %s2066_s25 }
  0x6b   : > { %s2072_s11 = scalar_lea.vmem [#allocation3], %s1327_s4 }
  0x6c   : > { %1806 = dma.done.wait (%p2418_p7), %s196_s6, 2048  }
  0x6d   : > { %1808 = vsyncadd (%p2418_p7), %s196_s6, 4294965248  ;;  %p2419_p2 = scmp.ne.s32.totalorder %s2410_s20, 0 }
  0x6f   : > { %1810 = dma.done.wait (%p2419_p2), [#allocation7], 3072  }
  0x70   : > { %1812 = vsyncadd (%p2419_p2), [#allocation7], 4294964224  ;;  %v2406_v0 = vmov 0   ;;  %v1599_v1 = vld [vmem:[#allocation8 + $0x4] ss:$8 sps:$4 sm:$0xff]   ;;  %v1625_v17 = vld [vmem:[#allocation6 + $0x10] sm:$0xff]  }
  0x71   : > { %622 = vmatprep.mubr.bf16.mxu1 %v2406_v0  ;;  %1598 = vset.pattern.permute.xlu1 %v2406_v0  ;;  %v1601_v2 = vld [vmem:[#allocation8] ss:$8 sps:$4 sm:$0xff]   ;;  %v1602_v3 = vld [vmem:[#allocation8 + $0x14] ss:$8 sps:$4 sm:$0xff]   ;;  %v1604_v4 = vld [vmem:[#allocation8 + $0x10] ss:$8 sps:$4 sm:$0xff]  }
  0x72   : > { %590 = vmatprep.subr.bf16.mxu1 %v1599_v1  ;;  %v1605_v5 = vld [vmem:[#allocation8 + $0x24] ss:$8 sps:$4 sm:$0xff]   ;;  %v1607_v6 = vld [vmem:[#allocation8 + $0x20] ss:$8 sps:$4 sm:$0xff]   ;;  %v1608_v7 = vld [vmem:[#allocation8 + $0x34] ss:$8 sps:$4 sm:$0xff]  }
  0x73   : > { %591 = vmatpush1.bf16.msra.mxu1 %v1601_v2  ;;  %v2085_v8 = vld [vmem:[%s2072_s11] sm:$0xff]  ;;  %v1610_v9 = vld [vmem:[#allocation8 + $0x30] ss:$8 sps:$4 sm:$0xff]   ;;  %v2088_v10 = vld [vmem:[%s2072_s11 + $0x8] sm:$0xff]  ;;  %s2310_s20 = scalar_lea.vmem [#allocation9], %s1327_s4  ;;  %s1361_s22 = sshll.u32 %s1831_s15, 11 }
  0x74   : > { %592 = vmatprep.subr.bf16.mxu1 %v1602_v3  ;;  %v1611_v11 = vld [vmem:[#allocation8 + $0x44] ss:$8 sps:$4 sm:$0xff]   ;;  %v486_v12 = vpack.c.bf16 %v2088_v10, %v2085_v8  ;;  %v1613_v14 = vld [vmem:[#allocation8 + $0x40] ss:$8 sps:$4 sm:$0xff]   ;;  %v1614_v16 = vld [vmem:[#allocation8 + $0x54] ss:$8 sps:$4 sm:$0xff]   ;;  %s2343_s8 = scalar_lea.hbm %s2401_s3, %s1361_s22 }
  0x75   : > { %v1623_v13 = vld [vmem:[#allocation6] sm:$0xff]   ;;  %v1624_v15 = vld [vmem:[#allocation6 + $0x8] sm:$0xff]   ;;  %v1616_v18 = vld [vmem:[#allocation8 + $0x50] ss:$8 sps:$4 sm:$0xff]   ;;  %s1215_s24 = sshll.u32 %s2310_s20, 4  ;;  %s1202_s15 = scalar_lea.sflag [#allocation5], %s2066_s25  ;;  %s2345_s24 = int_to_ptr.vmem [resolvable:$true] %s1215_s24 }
  0x76   : > { %1426 = vmatprep.mubr.bf16.mxu0 %v486_v12  ;;  %1410 = vmatprep.subr.bf16.mxu0 %v1623_v13  ;;  %v1617_v19 = vld [vmem:[#allocation8 + $0x64] ss:$8 sps:$4 sm:$0xff]   ;;  %v1626_v20 = vld [vmem:[#allocation6 + $0x18] sm:$0xff]   ;;  %v1619_v21 = vld [vmem:[#allocation8 + $0x60] ss:$8 sps:$4 sm:$0xff]   ;;  %s1753_s26 = scalar_lea.vmem %s2345_s24, 2048 }
  0x77   : > { %593 = vmatpush1.bf16.msra.mxu1 %v1604_v4  ;;  %1411 = vmatpush3.bf16.msra.mxu0 %v1623_v13  ;;  %v1620_v22 = vld [vmem:[#allocation8 + $0x74] ss:$8 sps:$4 sm:$0xff]   ;;  %v1627_v23 = vld [vmem:[#allocation6 + $0x20] sm:$0xff]   ;;  %v1622_v24 = vld [vmem:[#allocation8 + $0x70] ss:$8 sps:$4 sm:$0xff]   ;;  %p1754_p8 = scmp.ne.s32.totalorder %s2345_s24, %s1753_s26  ;;  %p2430_p12 = scmp.ne.s32.totalorder %s2416_s27, 0 }
  0x78   : > { %594 = vmatprep.subr.bf16.mxu1 %v1605_v5  ;;  %1412 = vmatprep.subr.bf16.mxu0 %v1624_v15  ;;  %v1628_v25 = vld [vmem:[#allocation6 + $0x28] sm:$0xff]   ;;  %v1629_v26 = vld [vmem:[#allocation6 + $0x30] sm:$0xff]   ;;  %v2097_v28 = vld [vmem:[%s2072_s11 + $0x18] sm:$0xff]  ;;  %s1849_s18 = smov [#allocation9]  }
  0x79   : > { %v2094_v27 = vld [vmem:[%s2072_s11 + $0x10] sm:$0xff]  ;;  %v1630_v30 = vld [vmem:[#allocation6 + $0x38] sm:$0xff]   ;;  %v2103_v31 = vld [vmem:[%s2072_s11 + $0x20] sm:$0xff]  ;;  %p1755_p1 = pnand %p1754_p8, %p2430_p12  ;;  %s1757_s7 = sshll.u32 %s1849_s18, 4  ;;  %s1758_s7 = int_to_ptr.vmem [resolvable:$false] %s1757_s7 }
  0x7a   : > { %v487_v29 = vpack.c.bf16 %v2097_v28, %v2094_v27  ;;  %v2106_v32 = vld [vmem:[%s2072_s11 + $0x28] sm:$0xff]  ;;  %v2112_v34 = vld [vmem:[%s2072_s11 + $0x30] sm:$0xff]  ;;  %v2115_v35 = vld [vmem:[%s2072_s11 + $0x38] sm:$0xff]  ;;  %s1759_s30 = scalar_lea.vmem %s1758_s7, 4096  ;;  %p1760_p3 = scmp.lt.s32.totalorder %s2345_s24, %s1758_s7 }
  0x7b   : > { %595 = vmatpush1.bf16.msra.mxu1 %v1607_v6  ;;  %1413 = vmatpush3.bf16.msra.mxu0 %v1624_v15  ;;  %v488_v33 = vpack.c.bf16 %v2106_v32, %v2103_v31  ;;  %v2118_v36 = vld [vmem:[%s2072_s11 + $0x40] sm:$0xff]  ;;  %v2121_v37 = vld [vmem:[%s2072_s11 + $0x48] sm:$0xff]  ;;  %v489_v38 = vpack.c.bf16 %v2115_v35, %v2112_v34  ;;  %v2129_v40 = vld [vmem:[%s2072_s11 + $0x50] sm:$0xff]  ;;  %p1756_p10 = pneg %p1755_p1  ;;  %p1761_p5 = scmp.lt.s32.totalorder %s1759_s30, %s1753_s26 }
  0x7c   : > { %596 = vmatprep.subr.bf16.mxu1 %v1608_v7  ;;  %1414 = vmatprep.subr.bf16.mxu0 %v1625_v17  ;;  %v490_v39 = vpack.c.bf16 %v2121_v37, %v2118_v36  ;;  %v2132_v41 = vld [vmem:[%s2072_s11 + $0x58] sm:$0xff]  ;;  %v2135_v42 = vld [vmem:[%s2072_s11 + $0x60] sm:$0xff]  ;;  %v2138_v43 = vld [vmem:[%s2072_s11 + $0x68] sm:$0xff] }
  0x7d   : > { %2420 = vst [vmem:[#allocation13_spill] sm:$0xff] %v2135_v42  ;;  %2421 = vst [vmem:[#allocation14_spill] sm:$0xff] %v2138_v43  ;;  %v491_v44 = vpack.c.bf16 %v2132_v41, %v2129_v40  ;;  %v492_v45 = vpack.c.bf16 %v2138_v43, %v2135_v42  ;;  %v2146_v46 = vld [vmem:[%s2072_s11 + $0x70] sm:$0xff]  ;;  %v2149_v47 = vld [vmem:[%s2072_s11 + $0x78] sm:$0xff]  ;;  %p1762_p9 = por %p1761_p5, %p1760_p3 }
  0x7e   : > { %2422 = vst [vmem:[#allocation15_spill] sm:$0xff] %v2149_v47  ;;  %v493_v48 = vpack.c.bf16 %v2149_v47, %v2146_v46 }
  0x7f   : > { %597 = vmatpush1.bf16.msra.mxu1 %v1610_v9  ;;  %1415 = vmatpush3.bf16.msra.mxu0 %v1625_v17  ;;  %p1763_p11 = pnand %p1762_p9, %p1756_p10 }
  0x80   : > { %598 = vmatprep.subr.bf16.mxu1 %v1611_v11  ;;  %1416 = vmatprep.subr.bf16.mxu0 %v1626_v20 }
  0x83   : > { %599 = vmatpush1.bf16.msra.mxu1 %v1613_v14  ;;  %1417 = vmatpush3.bf16.msra.mxu0 %v1626_v20 }
  0x84   : > { %600 = vmatprep.subr.bf16.mxu1 %v1614_v16  ;;  %1418 = vmatprep.subr.bf16.mxu0 %v1627_v23 }
  0x87   : > { %601 = vmatpush1.bf16.msra.mxu1 %v1616_v18  ;;  %1419 = vmatpush3.bf16.msra.mxu0 %v1627_v23 }
  0x88   : > { %602 = vmatprep.subr.bf16.mxu1 %v1617_v19  ;;  %1420 = vmatprep.subr.bf16.mxu0 %v1628_v25 }
  0x8b   : > { %603 = vmatpush1.bf16.msra.mxu1 %v1619_v21  ;;  %1421 = vmatpush3.bf16.msra.mxu0 %v1628_v25 }
  0x8c   : > { %604 = vmatprep.subr.bf16.mxu1 %v1620_v22  ;;  %1422 = vmatprep.subr.bf16.mxu0 %v1629_v26 }
  0x8f   : > { %605 = vmatpush1.bf16.msra.mxu1 %v1622_v24  ;;  %1423 = vmatpush3.bf16.msra.mxu0 %v1629_v26 }
  0x90   : > { %1424 = vmatprep.subr.bf16.mxu0 %v1630_v30 }
  0x92   : > { %623 = vmatmul.mubr.bf16.vlgmr.msra.gmra.mrb[0].mxu1 %v486_v12 }
  0x93   : > { %632 = vmatprep.mubr.bf16.mxu1 %v2406_v0  ;;  %1425 = vmatpush3.bf16.msra.mxu0 %v1630_v30 }
  0x96   : > { %1427 = vmatmul.mubr.bf16.vlgmr.msra.gmra.mrb[0].mxu0 %v487_v29 }
  0x97   : > { %1430 = vmatprep.mubr.bf16.mxu0 %v488_v33 }
  0x9a   : > { %633 = vmatmul.mubr.bf16.gmra.mrb[4].mxu1 %v487_v29 }
  0x9b   : > { %642 = vmatprep.mubr.bf16.mxu1 %v2406_v0 }
  0x9e   : > { %1431 = vmatmul.mubr.bf16.gmra.mrb[4].mxu0 %v489_v38 }
  0x9f   : > { %1434 = vmatprep.mubr.bf16.mxu0 %v490_v39 }
  0xa2   : > { %643 = vmatmul.mubr.bf16.gmra.mrb[8].mxu1 %v488_v33 }
  0xa3   : > { %652 = vmatprep.mubr.bf16.mxu1 %v2406_v0 }
  0xa6   : > { %1435 = vmatmul.mubr.bf16.gmra.mrb[8].mxu0 %v491_v44 }
  0xa7   : > { %1438 = vmatprep.mubr.bf16.mxu0 %v492_v45 }
  0xaa   : > { %653 = vmatmul.mubr.bf16.gmra.mrb[12].mxu1 %v489_v38 }
  0xab   : > { %662 = vmatprep.mubr.bf16.mxu1 %v2406_v0 }
  0xae   : > { %1439 = vmatmul.mubr.bf16.gmra.mrb[12].mxu0 %v493_v48 }
  0xb2   : > { %663 = vmatmul.mubr.bf16.gmra.mrb[16].mxu1 %v490_v39 }
  0xb3   : > { %672 = vmatprep.mubr.bf16.mxu1 %v2406_v0 }
  0xba   : > { %673 = vmatmul.mubr.bf16.gmra.mrb[20].mxu1 %v491_v44 }
  0xbb   : > { %682 = vmatprep.mubr.bf16.mxu1 %v2406_v0 }
  0xc2   : > { %683 = vmatmul.mubr.bf16.gmra.mrb[24].mxu1 %v492_v45 }
  0xc3   : > { %692 = vmatprep.mubr.bf16.mxu1 %v2406_v0 }
  0xca   : > { %693 = vmatmul.mubr.bf16.gmra.mrb[28].mxu1 %v493_v48 }
 0x165   : > { %v624_v49 = vpop.f32.mrb[0].mxu1 }
 0x166   : > { %v2155_v50 = vpop.f32.mrb[1].mxu1 }
 0x167   : > { %v628_v51 = vpop.f32.mrb[2].mxu1 }
 0x168   : > { %v703_v52 = vpack.c.bf16 %v628_v51, %v624_v49  ;;  %v2157_v53 = vpop.f32.mrb[3].mxu1 }
 0x169   : > { %v2163_v59 = vpop.f32.mrb[0].mxu0 }
 0x16a   : > { %1442 = vmatprep.subr.bf16.mxu0 %v703_v52  ;;  %v357_v60 = vpop.f32.mrb[1].mxu0 }
 0x16b   : > { %1443 = vmatpush3.bf16.xpose.msra.mxu0 %v703_v52  ;;  %v2165_v62 = vpop.f32.mrb[2].mxu0 }
 0x16c   : > { %v421_v1 = vpack.c.bf16 %v2165_v62, %v2163_v59  ;;  %v360_v2 = vpop.f32.mrb[3].mxu0 }
 0x16d   : > { %v634_v54 = vpop.f32.mrb[4].mxu1  ;;  %v420_v4 = vpack.c.bf16 %v360_v2, %v357_v60 }
 0x16e   : > { %v2159_v55 = vpop.f32.mrb[5].mxu1 }
 0x16f   : > { %v638_v56 = vpop.f32.mrb[6].mxu1  ;;  %1458 = vmatprep.mubr.bf16.mxu0 %v420_v4 }
 0x170   : > { %v704_v57 = vpack.c.bf16 %v638_v56, %v634_v54  ;;  %v2161_v58 = vpop.f32.mrb[7].mxu1 }
 0x171   : > { %v1432_v7 = vpop.f32.mrb[4].mxu0 }
 0x172   : > { %1444 = vmatprep.subr.bf16.mxu0 %v704_v57  ;;  %v373_v9 = vpop.f32.mrb[5].mxu0 }
 0x173   : > { %1445 = vmatpush3.bf16.xpose.msra.mxu0 %v704_v57  ;;  %v1433_v12 = vpop.f32.mrb[6].mxu0 }
 0x174   : > { %v423_v14 = vpack.c.bf16 %v1433_v12, %v1432_v7  ;;  %v376_v15 = vpop.f32.mrb[7].mxu0 }
 0x175   : > { %v644_v61 = vpop.f32.mrb[8].mxu1  ;;  %v422_v17 = vpack.c.bf16 %v376_v15, %v373_v9 }
 0x176   : > { %v2167_v63 = vpop.f32.mrb[9].mxu1 }
 0x177   : > { %v648_v3 = vpop.f32.mrb[10].mxu1 }
 0x178   : > { %v705_v5 = vpack.c.bf16 %v648_v3, %v644_v61  ;;  %v2171_v6 = vpop.f32.mrb[11].mxu1 }
 0x179   : > { %v1436_v20 = vpop.f32.mrb[8].mxu0 }
 0x17a   : > { %1446 = vmatprep.subr.bf16.mxu0 %v705_v5  ;;  %v389_v21 = vpop.f32.mrb[9].mxu0 }
 0x17b   : > { %1447 = vmatpush3.bf16.xpose.msra.mxu0 %v705_v5  ;;  %v1437_v23 = vpop.f32.mrb[10].mxu0 }
 0x17c   : > { %v425_v25 = vpack.c.bf16 %v1437_v23, %v1436_v20  ;;  %v392_v26 = vpop.f32.mrb[11].mxu0 }
 0x17d   : > { %v654_v11 = vpop.f32.mrb[12].mxu1  ;;  %v424_v30 = vpack.c.bf16 %v392_v26, %v389_v21 }
 0x17e   : > { %v2173_v13 = vpop.f32.mrb[13].mxu1 }
 0x17f   : > { %v658_v16 = vpop.f32.mrb[14].mxu1 }
 0x180   : > { %v706_v18 = vpack.c.bf16 %v658_v16, %v654_v11  ;;  %v2175_v19 = vpop.f32.mrb[15].mxu1 }
 0x181   : > { %v1440_v39 = vpop.f32.mrb[12].mxu0 }
 0x182   : > { %1448 = vmatprep.subr.bf16.mxu0 %v706_v18  ;;  %v405_v44 = vpop.f32.mrb[13].mxu0 }
 0x183   : > { %1449 = vmatpush3.bf16.xpose.msra.mxu0 %v706_v18  ;;  %v1441_v48 = vpop.f32.mrb[14].mxu0 }
 0x184   : > { %v427_v51 = vpack.c.bf16 %v1441_v48, %v1440_v39  ;;  %v408_v52 = vpop.f32.mrb[15].mxu0 }
 0x185   : > { %v664_v22 = vpop.f32.mrb[16].mxu1  ;;  %v426_v56 = vpack.c.bf16 %v408_v52, %v405_v44 }
 0x186   : > { %v2177_v24 = vpop.f32.mrb[17].mxu1 }
 0x187   : > { %v668_v29 = vpop.f32.mrb[18].mxu1 }
 0x188   : > { %v707_v33 = vpack.c.bf16 %v668_v29, %v664_v22  ;;  %v2179_v38 = vpop.f32.mrb[19].mxu1 }
 0x18a   : > { %1450 = vmatprep.subr.bf16.mxu0 %v707_v33 }
 0x18b   : > { %1451 = vmatpush3.bf16.xpose.msra.mxu0 %v707_v33 }
 0x18d   : > { %v674_v45 = vpop.f32.mrb[20].mxu1 }
 0x18e   : > { %v2181_v49 = vpop.f32.mrb[21].mxu1 }
 0x18f   : > { %v678_v54 = vpop.f32.mrb[22].mxu1 }
 0x190   : > { %v708_v57 = vpack.c.bf16 %v678_v54, %v674_v45  ;;  %v2183_v59 = vpop.f32.mrb[23].mxu1 }
 0x192   : > { %1452 = vmatprep.subr.bf16.mxu0 %v708_v57 }
 0x193   : > { %1453 = vmatpush3.bf16.xpose.msra.mxu0 %v708_v57 }
 0x195   : > { %v684_v60 = vpop.f32.mrb[24].mxu1 }
 0x196   : > { %v2185_v61 = vpop.f32.mrb[25].mxu1 }
 0x197   : > { %v688_v62 = vpop.f32.mrb[26].mxu1 }
 0x198   : > { %v709_v2 = vpack.c.bf16 %v688_v62, %v684_v60  ;;  %v2187_v3 = vpop.f32.mrb[27].mxu1 }
 0x19a   : > { %1454 = vmatprep.subr.bf16.mxu0 %v709_v2 }
 0x19b   : > { %1455 = vmatpush3.bf16.xpose.msra.mxu0 %v709_v2 }
 0x19d   : > { %v694_v4 = vpop.f32.mrb[28].mxu1 }
 0x19e   : > { %v2189_v5 = vpop.f32.mrb[29].mxu1 }
 0x19f   : > { %v698_v7 = vpop.f32.mrb[30].mxu1 }
 0x1a0   : > { %v710_v9 = vpack.c.bf16 %v698_v7, %v694_v4  ;;  %v2191_v11 = vpop.f32.mrb[31].mxu1 }
 0x1a2   : > { %1456 = vmatprep.subr.bf16.mxu0 %v710_v9 }
 0x1a3   : > { %1457 = vmatpush3.bf16.xpose.msra.mxu0 %v710_v9 }
 0x1aa   : > { %1459 = vmatmul.mubr.bf16.vlgmr.msra.gmra.mrb[16].mxu0 %v421_v1 }
 0x1ab   : > { %1462 = vmatprep.mubr.bf16.mxu0 %v422_v17 }
 0x1b2   : > { %1463 = vmatmul.mubr.bf16.gmra.mrb[20].mxu0 %v423_v14 }
 0x1b3   : > { %1466 = vmatprep.mubr.bf16.mxu0 %v424_v30 }
 0x1ba   : > { %1467 = vmatmul.mubr.bf16.gmra.mrb[24].mxu0 %v425_v25 }
 0x1bb   : > { %1470 = vmatprep.mubr.bf16.mxu0 %v426_v56 }
 0x1c2   : > { %1471 = vmatmul.mubr.bf16.gmra.mrb[28].mxu0 %v427_v51 }
 0x27d   : > { %v1460_v12 = vpop.f32.mrb[16].mxu0 }
 0x27e   : > { %v753_v15 = vpop.f32.mrb[17].mxu0 }
 0x27f   : > { %v1461_v16 = vpop.f32.mrb[18].mxu0 }
 0x280   : > { %v756_v18 = vpop.f32.mrb[19].mxu0 }
 0x285   : > { %v1464_v20 = vpop.f32.mrb[20].mxu0 }
 0x286   : > { %v818_v21 = vmax.f32 %v1460_v12, %v1464_v20  ;;  %v769_v22 = vpop.f32.mrb[21].mxu0 }
 0x287   : > { %v816_v23 = vmax.f32 %v753_v15, %v769_v22  ;;  %v1465_v26 = vpop.f32.mrb[22].mxu0 }
 0x288   : > { %v819_v29 = vmax.f32 %v1461_v16, %v1465_v26  ;;  %v772_v33 = vpop.f32.mrb[23].mxu0 }
 0x289   : > { %v817_v39 = vmax.f32 %v756_v18, %v772_v33 }
 0x28d   : > { %v1468_v44 = vpop.f32.mrb[24].mxu0 }
 0x28e   : > { %v822_v1 = vmax.f32 %v818_v21, %v1468_v44  ;;  %v785_v17 = vpop.f32.mrb[25].mxu0 }
 0x28f   : > { %v820_v14 = vmax.f32 %v816_v23, %v785_v17  ;;  %v1469_v30 = vpop.f32.mrb[26].mxu0 }
 0x290   : > { %v823_v25 = vmax.f32 %v819_v29, %v1469_v30  ;;  %v788_v45 = vpop.f32.mrb[27].mxu0 }
 0x291   : > { %v821_v48 = vmax.f32 %v817_v39, %v788_v45 }
 0x295   : > { %v1472_v51 = vpop.f32.mrb[28].mxu0 }
 0x296   : > { %v826_v52 = vmax.f32 %v822_v1, %v1472_v51  ;;  %v801_v54 = vpop.f32.mrb[29].mxu0 }
 0x297   : > { %v824_v56 = vmax.f32 %v820_v14, %v801_v54  ;;  %v1473_v57 = vpop.f32.mrb[30].mxu0 }
 0x298   : > { %v827_v60 = vmax.f32 %v823_v25, %v1473_v57  ;;  %v804_v62 = vpop.f32.mrb[31].mxu0 }
 0x299   : > { %v825_v2 = vmax.f32 %v821_v48, %v804_v62 }
 0x29a   : > { %v829_v4 = vmax.f32 %v826_v52, %v827_v60 }
 0x29b   : > { %v828_v7 = vmax.f32 %v824_v56, %v825_v2 }
 0x29d   : > { %v830_v9 = vmax.f32 %v828_v7, %v829_v4 }
 0x29f   : > { %v831_v0 = vrot.slane %v830_v9, 4 }
 0x2a1   : > { %v832_v43 = vmax.f32 %v830_v9, %v831_v0 }
 0x2a3   : > { %v833_v21 = vrot.slane %v832_v43, 2 }
 0x2a5   : > { %v834_v47 = vmax.f32 %v832_v43, %v833_v21 }
 0x2a7   : > { %v835_v23 = vrot.slane %v834_v47, 1 }
 0x2a9   : > { %v2193_v42 = vmax.f32 %v834_v47, %v835_v23 }
 0x2ab   : > { %v837_v29 = vsub.f32 %v753_v15, %v2193_v42  ;;  %v838_v39 = vsub.f32 %v756_v18, %v2193_v42  ;;  %v839_v1 = vsub.f32 %v1460_v12, %v2193_v42  ;;  %v840_v14 = vsub.f32 %v1461_v16, %v2193_v42 }
 0x2ac   : > { %v841_v25 = vsub.f32 %v769_v22, %v2193_v42  ;;  %v842_v48 = vsub.f32 %v772_v33, %v2193_v42  ;;  %v843_v52 = vsub.f32 %v1464_v20, %v2193_v42  ;;  %v844_v0 = vsub.f32 %v1465_v26, %v2193_v42 }
 0x2ad   : > { %v845_v43 = vsub.f32 %v785_v17, %v2193_v42  ;;  %v846_v47 = vsub.f32 %v788_v45, %v2193_v42  ;;  %v847_v15 = vsub.f32 %v1468_v44, %v2193_v42  ;;  %v848_v18 = vsub.f32 %v1469_v30, %v2193_v42 }
 0x2ae   : > { %v849_v12 = vsub.f32 %v801_v54, %v2193_v42  ;;  %v850_v16 = vsub.f32 %v804_v62, %v2193_v42  ;;  %v853_v56 = vmul.f32 1.442695, %v837_v29  ;;  %v855_v22 = vmul.f32 1.442695, %v838_v39 }
 0x2af   : > { %v857_v60 = vmul.f32 1.442695, %v839_v1  ;;  %v859_v33 = vmul.f32 1.442695, %v840_v14  ;;  %v851_v20 = vsub.f32 %v1472_v51, %v2193_v42  ;;  %v861_v26 = vmul.f32 1.442695, %v841_v25 }
 0x2b0   : > { %1631 = vpow2.f32 %v853_v56  ;;  %v863_v17 = vmul.f32 1.442695, %v842_v48  ;;  %v865_v45 = vmul.f32 1.442695, %v843_v52  ;;  %v867_v44 = vmul.f32 1.442695, %v844_v0 }
 0x2b1   : > { %1633 = vpow2.f32 %v855_v22  ;;  %v852_v30 = vsub.f32 %v1473_v57, %v2193_v42  ;;  %v869_v54 = vmul.f32 1.442695, %v845_v43  ;;  %v871_v62 = vmul.f32 1.442695, %v846_v47 }
 0x2b2   : > { %1635 = vpow2.f32 %v857_v60  ;;  %v873_v2 = vmul.f32 1.442695, %v847_v15  ;;  %v875_v4 = vmul.f32 1.442695, %v848_v18  ;;  %v877_v51 = vmul.f32 1.442695, %v849_v12 }
 0x2b3   : > { %1637 = vpow2.f32 %v859_v33  ;;  %v879_v7 = vmul.f32 1.442695, %v850_v16  ;;  %v881_v21 = vmul.f32 1.442695, %v851_v20  ;;  %v883_v29 = vmul.f32 1.442695, %v852_v30 }
 0x2b4   : > { %1639 = vpow2.f32 %v861_v26 }
 0x2b5   : > { %1641 = vpow2.f32 %v863_v17 }
 0x2b6   : > { %1643 = vpow2.f32 %v865_v45 }
 0x2b7   : > { %1645 = vpow2.f32 %v867_v44 }
 0x2b8   : > { %1647 = vpow2.f32 %v869_v54 }
 0x2b9   : > { %1649 = vpow2.f32 %v871_v62 }
 0x2ba   : > { %v1632_v9 = vpop.eup %1631  ;;  %1651 = vpow2.f32 %v873_v2 }
 0x2bb   : > { %v1634_v23 = vpop.eup %1633  ;;  %1653 = vpow2.f32 %v875_v4 }
 0x2bc   : > { %v2211_v39 = vpop.eup %1635  ;;  %1655 = vpow2.f32 %v877_v51  ;;  %v885_v57 = vadd.f32 %v1634_v23, %v1632_v9  ;;  %v1048_v1 = vpack.c.bf16 %v1634_v23, %v1632_v9  ;;  %v906_v23 = vsub.f32 0.0, %v2193_v42 }
 0x2bd   : > { %v2213_v14 = vpop.eup %1637  ;;  %1657 = vpow2.f32 %v879_v7 }
 0x2be   : > { %v2215_v25 = vpop.eup %1639  ;;  %v886_v48 = vadd.f32 %v2211_v39, %v885_v57  ;;  %1490 = vmatprep.mubr.bf16.mxu1 %v1048_v1  ;;  %1659 = vpow2.f32 %v881_v21  ;;  %v1049_v52 = vpack.c.bf16 %v2213_v14, %v2211_v39  ;;  %v907_v1 = vmul.f32 1.442695, %v906_v23 }
 0x2bf   : > { %v2220_v0 = vpop.eup %1641  ;;  %1661 = vpow2.f32 %v883_v29  ;;  %v2423_v23 = vmov 0  }
 0x2c0   : > { %v2222_v43 = vpop.eup %1643  ;;  %v887_v47 = vadd.f32 %v2213_v14, %v886_v48  ;;  %v1050_v15 = vpack.c.bf16 %v2220_v0, %v2215_v25  ;;  %1663 = vpow2.f32 %v907_v1 }
 0x2c1   : > { %v2227_v18 = vpop.eup %1645 }
 0x2c2   : > { %v2229_v12 = vpop.eup %1647  ;;  %v888_v16 = vadd.f32 %v2215_v25, %v887_v47  ;;  %v1051_v56 = vpack.c.bf16 %v2227_v18, %v2222_v43 }
 0x2c3   : > { %v2234_v22 = vpop.eup %1649 }
 0x2c4   : > { %v2236_v60 = vpop.eup %1651  ;;  %v889_v33 = vadd.f32 %v2220_v0, %v888_v16  ;;  %v1052_v20 = vpack.c.bf16 %v2234_v22, %v2229_v12 }
 0x2c5   : > { %v2241_v26 = vpop.eup %1653 }
 0x2c6   : > { %v2243_v17 = vpop.eup %1655  ;;  %v890_v45 = vadd.f32 %v2222_v43, %v889_v33 }
 0x2c7   : > { %v2248_v30 = vpop.eup %1657 }
 0x2c8   : > { %v2250_v54 = vpop.eup %1659  ;;  %v891_v62 = vadd.f32 %v2227_v18, %v890_v45 }
 0x2c9   : > { %v2255_v4 = vpop.eup %1661 }
 0x2ca   : > { %v892_v51 = vadd.f32 %v2229_v12, %v891_v62  ;;  %v1664_v7 = vpop.eup %1663 }
 0x2cb   : > { %v909_v42 = vmul.f32 96.0, %v1664_v7 }
 0x2cc   : > { %v893_v9 = vadd.f32 %v2234_v22, %v892_v51 }
 0x2ce   : > { %v894_v21 = vadd.f32 %v2236_v60, %v893_v9 }
 0x2d0   : > { %v895_v29 = vadd.f32 %v2241_v26, %v894_v21 }
 0x2d2   : > { %v896_v57 = vadd.f32 %v2243_v17, %v895_v29 }
 0x2d4   : > { %v897_v48 = vadd.f32 %v2248_v30, %v896_v57 }
 0x2d6   : > { %v898_v47 = vadd.f32 %v2250_v54, %v897_v48 }
 0x2d8   : > { %v899_v16 = vadd.f32 %v2255_v4, %v898_v47 }
 0x2da   : > { %v900_v33 = vrot.slane %v899_v16, 4 }
 0x2dc   : > { %v901_v45 = vadd.f32 %v900_v33, %v899_v16 }
 0x2de   : > { %v902_v62 = vrot.slane %v901_v45, 2 }
 0x2e0   : > { %v903_v51 = vadd.f32 %v902_v62, %v901_v45 }
 0x2e2   : > { %v904_v9 = vrot.slane %v903_v51, 1 }
 0x2e4   : > { %v905_v2 = vadd.f32 %v904_v9, %v903_v51 }
 0x2e6   : > { %v910_v44 = vsub.f32 %v905_v2, %v909_v42 }
 0x2e8   : > { %1665 = vrcp.f32 %v910_v44 }
 0x2f2   : > { %v1666_v21 = vpop.eup %1665 }
 0x2f3   : > { %912 = vxpose.xlu0.b32.start.end [1/1] (short) %v1666_v21, 128 }
 0x31c   : > { %1597 = vset.pattern.permute.xlu0 %v2423_v23 }
 0x373   : > { %v928_v29 = vpop.trf.xlu0 }
 0x374   : > { %946 = vperm.xlu0 %1597, %v928_v29  }
 0x377   : > { %v929_v57 = vpop.trf.xlu0 }
 0x378   : > { %951 = vperm.xlu1 %1598, %v929_v57  }
 0x37b   : > { %v930_v1 = vpop.trf.xlu0 }
 0x37c   : > { %956 = vperm.xlu1 %1598, %v930_v1  }
 0x37f   : > { %v931_v48 = vpop.trf.xlu0 }
 0x380   : > { %961 = vperm.xlu1 %1598, %v931_v48  }
 0x383   : > { %v932_v47 = vpop.trf.xlu0 }
 0x384   : > { %966 = vperm.xlu1 %1598, %v932_v47  }
 0x387   : > { %v933_v16 = vpop.trf.xlu0 }
 0x388   : > { %971 = vperm.xlu1 %1598, %v933_v16  }
 0x38b   : > { %v934_v33 = vpop.trf.xlu0 }
 0x38c   : > { %976 = vperm.xlu1 %1598, %v934_v33  }
 0x38f   : > { %v935_v2 = vpop.trf.xlu0 }
 0x390   : > { %981 = vperm.xlu1 %1598, %v935_v2  }
 0x393   : > { %v936_v44 = vpop.trf.xlu0 }
 0x394   : > { %986 = vperm.xlu1 %1598, %v936_v44  }
 0x397   : > { %v937_v7 = vpop.trf.xlu0 }
 0x398   : > { %991 = vperm.xlu1 %1598, %v937_v7  }
 0x39b   : > { %v938_v45 = vpop.trf.xlu0 }
 0x39c   : > { %996 = vperm.xlu1 %1598, %v938_v45  }
 0x39f   : > { %v939_v62 = vpop.trf.xlu0 }
 0x3a0   : > { %1001 = vperm.xlu1 %1598, %v939_v62  }
 0x3a3   : > { %v940_v51 = vpop.trf.xlu0 }
 0x3a4   : > { %1006 = vperm.xlu1 %1598, %v940_v51  }
 0x3a7   : > { %v941_v9 = vpop.trf.xlu0 }
 0x3a8   : > { %1011 = vperm.xlu1 %1598, %v941_v9  }
 0x3ab   : > { %v942_v42 = vpop.trf.xlu0 }
 0x3ac   : > { %1016 = vperm.xlu1 %1598, %v942_v42  }
 0x3af   : > { %v943_v21 = vpop.trf.xlu0 }
 0x3b0   : > { %1021 = vperm.xlu1 %1598, %v943_v21  }
 0x3f3   : > { %v947_v23 = vpop.permute.xlu0 %946 }
 0x3f4   : > { %v1024_v57 = vmul.f32 %v947_v23, %v2155_v50 }
 0x3f7   : > { %v952_v29 = vpop.permute.xlu1 %951 }
 0x3f8   : > { %v1025_v1 = vmul.f32 %v952_v29, %v2157_v53 }
 0x3fa   : > { %v1040_v48 = vpack.c.bf16 %v1025_v1, %v1024_v57 }
 0x3fb   : > { %v957_v47 = vpop.permute.xlu1 %956 }
 0x3fc   : > { %1474 = vmatprep.subr.bf16.mxu1 %v1040_v48  ;;  %v1026_v33 = vmul.f32 %v957_v47, %v2159_v55 }
 0x3fd   : > { %1475 = vmatpush3.bf16.msra.mxu1 %v1040_v48 }
 0x3ff   : > { %v962_v16 = vpop.permute.xlu1 %961 }
 0x400   : > { %v1027_v2 = vmul.f32 %v962_v16, %v2161_v58 }
 0x402   : > { %v1041_v44 = vpack.c.bf16 %v1027_v2, %v1026_v33 }
 0x403   : > { %v967_v7 = vpop.permute.xlu1 %966 }
 0x404   : > { %1476 = vmatprep.subr.bf16.mxu1 %v1041_v44  ;;  %v1028_v62 = vmul.f32 %v967_v7, %v2167_v63 }
 0x405   : > { %1477 = vmatpush3.bf16.msra.mxu1 %v1041_v44 }
 0x407   : > { %v972_v45 = vpop.permute.xlu1 %971 }
 0x408   : > { %v1029_v50 = vmul.f32 %v972_v45, %v2171_v6  ;;  %v2428_v45 = vld [vmem:[#allocation15_spill] sm:$0xff] }
 0x40a   : > { %v1042_v51 = vpack.c.bf16 %v1029_v50, %v1028_v62 }
 0x40b   : > { %v977_v53 = vpop.permute.xlu1 %976 }
 0x40c   : > { %1478 = vmatprep.subr.bf16.mxu1 %v1042_v51  ;;  %v1030_v42 = vmul.f32 %v977_v53, %v2173_v13 }
 0x40d   : > { %1479 = vmatpush3.bf16.msra.mxu1 %v1042_v51 }
 0x40f   : > { %v982_v9 = vpop.permute.xlu1 %981 }
 0x410   : > { %v1031_v55 = vmul.f32 %v982_v9, %v2175_v19 }
 0x412   : > { %v1043_v21 = vpack.c.bf16 %v1031_v55, %v1030_v42 }
 0x413   : > { %v987_v58 = vpop.permute.xlu1 %986 }
 0x414   : > { %1480 = vmatprep.subr.bf16.mxu1 %v1043_v21  ;;  %v1032_v29 = vmul.f32 %v987_v58, %v2177_v24 }
 0x415   : > { %1481 = vmatpush3.bf16.msra.mxu1 %v1043_v21 }
 0x417   : > { %v992_v23 = vpop.permute.xlu1 %991 }
 0x418   : > { %v1033_v63 = vmul.f32 %v992_v23, %v2179_v38 }
 0x41a   : > { %v1044_v57 = vpack.c.bf16 %v1033_v63, %v1032_v29 }
 0x41b   : > { %v997_v6 = vpop.permute.xlu1 %996 }
 0x41c   : > { %1482 = vmatprep.subr.bf16.mxu1 %v1044_v57  ;;  %v1034_v48 = vmul.f32 %v997_v6, %v2181_v49 }
 0x41d   : > { %1483 = vmatpush3.bf16.msra.mxu1 %v1044_v57 }
 0x41f   : > { %v1002_v1 = vpop.permute.xlu1 %1001 }
 0x420   : > { %v1035_v13 = vmul.f32 %v1002_v1, %v2183_v59 }
 0x422   : > { %v1045_v47 = vpack.c.bf16 %v1035_v13, %v1034_v48 }
 0x423   : > { %v1007_v19 = vpop.permute.xlu1 %1006 }
 0x424   : > { %1484 = vmatprep.subr.bf16.mxu1 %v1045_v47  ;;  %v1036_v33 = vmul.f32 %v1007_v19, %v2185_v61  ;;  %v2424_v61 = vpack.c.bf16 %v2241_v26, %v2236_v60 }
 0x425   : > { %1485 = vmatpush3.bf16.msra.mxu1 %v1045_v47 }
 0x427   : > { %v1012_v16 = vpop.permute.xlu1 %1011 }
 0x428   : > { %v1037_v24 = vmul.f32 %v1012_v16, %v2187_v3  ;;  %v2425_v3 = vpack.c.bf16 %v2248_v30, %v2243_v17 }
 0x42a   : > { %v1046_v2 = vpack.c.bf16 %v1037_v24, %v1036_v33 }
 0x42b   : > { %v1017_v38 = vpop.permute.xlu1 %1016 }
 0x42c   : > { %1486 = vmatprep.subr.bf16.mxu1 %v1046_v2  ;;  %v1038_v7 = vmul.f32 %v1017_v38, %v2189_v5  ;;  %v2426_v5 = vpack.c.bf16 %v2255_v4, %v2250_v54  ;;  %v2427_v54 = vld [vmem:[#allocation13_spill] sm:$0xff] }
 0x42d   : > { %1487 = vmatpush3.bf16.msra.mxu1 %v1046_v2 }
 0x42f   : > { %v1022_v44 = vpop.permute.xlu1 %1021 }
 0x430   : > { %v1039_v49 = vmul.f32 %v1022_v44, %v2191_v11 }
 0x432   : > { %v1047_v59 = vpack.c.bf16 %v1039_v49, %v1038_v7 }
 0x434   : > { %1488 = vmatprep.subr.bf16.mxu1 %v1047_v59 }
 0x435   : > { %1489 = vmatpush3.bf16.msra.mxu1 %v1047_v59 }
 0x438   : > { %1491 = vmatmul.mubr.bf16.vlgmr.msra.gmra.mrb[32].mxu1 %v1049_v52 }
 0x439   : > { %1494 = vmatprep.mubr.bf16.mxu1 %v1050_v15 }
 0x440   : > { %1495 = vmatmul.mubr.bf16.gmra.mrb[36].mxu1 %v1051_v56 }
 0x441   : > { %1498 = vmatprep.mubr.bf16.mxu1 %v1052_v20 }
 0x448   : > { %1499 = vmatmul.mubr.bf16.gmra.mrb[40].mxu1 %v2424_v61 }
 0x449   : > { %1502 = vmatprep.mubr.bf16.mxu1 %v2425_v3 }
 0x450   : > { %1503 = vmatmul.mubr.bf16.gmra.mrb[44].mxu1 %v2426_v5 }
 0x50b   : > { %v1492_v11 = vpop.f32.mrb[32].mxu1 }
 0x50c   : > { %v1171_v39 = vadd.f32 %v1492_v11, %v2094_v27  ;;  %v1090_v14 = vpop.f32.mrb[33].mxu1 }
 0x50d   : > { %v1169_v25 = vadd.f32 %v1090_v14, %v2085_v8  ;;  %v1493_v52 = vpop.f32.mrb[34].mxu1 }
 0x50e   : > { %1187 = vst [vmem:[%s2310_s20 + $0x10] sm:$0xff] %v1171_v39  ;;  %v1172_v0 = vadd.f32 %v1493_v52, %v2097_v28  ;;  %v1093_v43 = vpop.f32.mrb[35].mxu1 }
 0x50f   : > { %1185 = vst [vmem:[%s2310_s20] sm:$0xff] %v1169_v25  ;;  %v1170_v27 = vadd.f32 %v1093_v43, %v2088_v10 }
 0x510   : > { %1188 = vst [vmem:[%s2310_s20 + $0x18] sm:$0xff] %v1172_v0 }
 0x511   : > { %1186 = vst [vmem:[%s2310_s20 + $0x8] sm:$0xff] %v1170_v27 }
 0x513   : > { %v1496_v8 = vpop.f32.mrb[36].mxu1 }
 0x514   : > { %v1175_v15 = vadd.f32 %v1496_v8, %v2112_v34  ;;  %v1106_v18 = vpop.f32.mrb[37].mxu1 }
 0x515   : > { %v1173_v12 = vadd.f32 %v1106_v18, %v2103_v31  ;;  %v1497_v56 = vpop.f32.mrb[38].mxu1 }
 0x516   : > { %1191 = vst [vmem:[%s2310_s20 + $0x30] sm:$0xff] %v1175_v15  ;;  %v1176_v28 = vadd.f32 %v1497_v56, %v2115_v35  ;;  %v1109_v22 = vpop.f32.mrb[39].mxu1 }
 0x517   : > { %1189 = vst [vmem:[%s2310_s20 + $0x20] sm:$0xff] %v1173_v12  ;;  %v1174_v10 = vadd.f32 %v1109_v22, %v2106_v32 }
 0x518   : > { %1192 = vst [vmem:[%s2310_s20 + $0x38] sm:$0xff] %v1176_v28 }
 0x519   : > { %1190 = vst [vmem:[%s2310_s20 + $0x28] sm:$0xff] %v1174_v10 }
 0x51b   : > { %v1500_v34 = vpop.f32.mrb[40].mxu1 }
 0x51c   : > { %v1179_v60 = vadd.f32 %v1500_v34, %v2129_v40  ;;  %v1122_v20 = vpop.f32.mrb[41].mxu1 }
 0x51d   : > { %v1177_v31 = vadd.f32 %v1122_v20, %v2118_v36  ;;  %v1501_v26 = vpop.f32.mrb[42].mxu1 }
 0x51e   : > { %1195 = vst [vmem:[%s2310_s20 + $0x50] sm:$0xff] %v1179_v60  ;;  %v1180_v35 = vadd.f32 %v1501_v26, %v2132_v41  ;;  %v1125_v17 = vpop.f32.mrb[43].mxu1 }
 0x51f   : > { %1193 = vst [vmem:[%s2310_s20 + $0x40] sm:$0xff] %v1177_v31  ;;  %v1178_v32 = vadd.f32 %v1125_v17, %v2121_v37  ;;  %v2429_v37 = vld [vmem:[#allocation14_spill] sm:$0xff] }
 0x520   : > { %1196 = vst [vmem:[%s2310_s20 + $0x58] sm:$0xff] %v1180_v35 }
 0x521   : > { %1194 = vst [vmem:[%s2310_s20 + $0x48] sm:$0xff] %v1178_v32 }
 0x523   : > { %v1504_v30 = vpop.f32.mrb[44].mxu1 }
 0x524   : > { %v1183_v36 = vadd.f32 %v1504_v30, %v2146_v46  ;;  %v1138_v40 = vpop.f32.mrb[45].mxu1 }
 0x525   : > { %v1181_v4 = vadd.f32 %v1138_v40, %v2427_v54  ;;  %v1505_v41 = vpop.f32.mrb[46].mxu1 }
 0x526   : > { %1199 = vst [vmem:[%s2310_s20 + $0x70] sm:$0xff] %v1183_v36  ;;  %v1184_v62 = vadd.f32 %v1505_v41, %v2428_v45  ;;  %v1141_v50 = vpop.f32.mrb[47].mxu1 }
 0x527   : > { %1197 = vst [vmem:[%s2310_s20 + $0x60] sm:$0xff] %v1181_v4  ;;  %v1182_v46 = vadd.f32 %v1141_v50, %v2429_v37 }
 0x528   : > { %1200 = vst [vmem:[%s2310_s20 + $0x78] sm:$0xff] %v1184_v62 }
 0x529   : > { %1198 = vst [vmem:[%s2310_s20 + $0x68] sm:$0xff] %v1182_v46 }
 0x52a   : > { %1766 = shalt.err (!%p1763_p11)
}
 0x52b   : > { %s1767_s21 = scalar_lea.hbm %s2343_s8, 2048  ;;  %s1771_s4 = scalar_lea.hbm %s2401_s3, 4096 }
 0x52c   : > { %p1768_p0 = scmp.ne.s32.totalorder %s2343_s8, %s1767_s21  ;;  %p1772_p6 = scmp.lt.u32.totalorder %s2343_s8, %s2401_s3 }
 0x52d   : > { %p1773_p7 = scmp.lt.u32.totalorder %s1771_s4, %s1767_s21  ;;  %p1775_p8 = scmp.lt.u32.totalorder %s1767_s21, %s2343_s8 }
 0x52e   : > { %p1769_p4 = pnand %p1768_p0, %p2430_p12 }
 0x52f   : > { %p1774_p2 = por %p1773_p7, %p1772_p6 }
 0x530   : > { %p1770_p13 = pneg %p1769_p4 }
 0x531   : > { %p1776_p1 = por %p1775_p8, %p1774_p2 }
 0x533   : > { %p1777_p10 = pnand %p1776_p1, %p1770_p13 }
 0x535   : > { %1780 = shalt.err (!%p1777_p10)
}
 0x536   : > { %s1850_s20 = smov 128   ;;  %s1851_s22 = smov 8  }
 0x537   : > { %1516 = dma.vmem_to_hbm [thread:$0]  (%p2430_p12), %s2345_s24, 2048, %s2343_s8, %s1202_s15, %s1850_s20, %s1850_s20, %s1851_s22  }
 0x538 PF: > { %s1230_s9 = sand.u32 1, %s1819_s12   ;;  %p2431_p3 = scmp.ne.s32.totalorder %s2413_s23, 0 }
 0x539   : > { %p2432_p5 = scmp.ge.s32.totalorder %s1839_s17, 2  ;;  %s1231_s10 = scalar_lea.sflag [#allocation5], %s1230_s9 }
 0x53b   : > { %p1530_p9 = pnand %p2432_p5, %p2431_p3 }
 0x53d   : > { %1814 = dma.done.wait (!%p1530_p9), %s1231_s10, 2048  }
 0x53e   : > { %1816 = vsyncadd (!%p1530_p9), %s1231_s10, 4294965248  ;;  %s20_s17 = sadd.s32 1, %s1839_s17   ;;  %s2433_s12 = smov %s1823_s13 }
 0x53f   : > { %p17_p11 = scmp.ge.s32.totalorder %s20_s17, 4   ;;  %s2434_s13 = smov %s1827_s14 }
 0x540   : > { %s2435_s14 = smov %s2017_s5  ;;  %s2436_s15 = smov %s1835_s16 }
 0x541   : > { %s2437_s16 = smov %s2439_s19  ;;  %19 = sbr.rel (!%p17_p11) target bundleno = 7 (0x7), region = 90 }
 0x548   :  { %1236 = vsyncpa [#allocation4], 1 }
 0x549   :  { %1238 = vsyncpa [#allocation4 + $0x1], 1 }
 0x54a   :  { %1239 = vsyncpa [#allocation7], 1 }
 0x54b   :  { %1240 = vsyncpa [#allocation5], 1 }
 0x54c   :  { %1242 = vsyncpa [#allocation5 + $0x1], 1 }

</bundles_post_ra>
